<compile_context>
chip_gen: v5e
topology: v5e:2x2
jax: 0.10.0
libtpu: 0.0.40
codegen_flags: <defaults>
</compile_context>

<pallas_src>
import jax
import jax.numpy as jnp
from jax.experimental import pallas as pl
from jax.experimental.pallas import tpu as pltpu


# ----------------------------------------------------------------------------
# kernel: one column-block of  O = A^T @ X
# ----------------------------------------------------------------------------
def _nconv_kernel(at_ref, x_ref, o_ref):
    o_ref[...] = jnp.dot(
        at_ref[...], x_ref[...], preferred_element_type=jnp.float32
    ).astype(o_ref.dtype)


def _pick_col_tile(m_total, n_rows, elem_bytes=4, block_bytes_budget=2 * 1024 * 1024):
    """Largest lane-dense (multiple-of-128) column tile that divides m_total,
    fits a modest VMEM budget, and (when possible) leaves >= 2 grid steps so
    the parallel grid axis can be split across v7x's two TensorCores."""
    cap = max(128, block_bytes_budget // max(1, n_rows * elem_bytes))
    cap = min(cap, m_total)
    cap = (cap // 128) * 128
    best_single = None
    t = cap
    while t >= 128:
        if m_total % t == 0:
            if m_total // t >= 2:
                return t  # lane-dense and >=2 parallel grid steps
            if best_single is None:
                best_single = t  # lane-dense, single step
        t -= 128
    # fall back to one full-extent block (always legal: lane dim == array dim)
    return best_single if best_single is not None else m_total


# ----------------------------------------------------------------------------
# nconv wrapper
# ----------------------------------------------------------------------------
@jax.jit
def nconv(x, A):
    """x: (B, C, N, T) float array, A: (N, N).  Returns (B, C, N, T)."""
    B, C, N, T = x.shape
    M = B * C * T

    # One-time relayout: (B, C, N, T) -> (N, B*C*T).  Puts the contraction dim
    # (nodes) on the sublane axis and the big batch*channel*time dim on lanes.
    x2 = jnp.transpose(x, (2, 0, 1, 3)).reshape(N, M)
    at = A.T  # hoisted once; kernel never re-transposes

    tm = _pick_col_tile(M, N)
    grid = (M // tm,)

    out2 = pl.pallas_call(
        _nconv_kernel,
        out_shape=jax.ShapeDtypeStruct((N, M), x.dtype),
        grid=grid,
        in_specs=[
            pl.BlockSpec((N, N), lambda j: (0, 0)),   # A^T: resident across grid
            pl.BlockSpec((N, tm), lambda j: (0, j)),  # lane-dense X column block
        ],
        out_specs=pl.BlockSpec((N, tm), lambda j: (0, j)),
        compiler_params=pltpu.CompilerParams(
            dimension_semantics=("parallel",),
        ),
    )(at, x2)

    # (N, B*C*T) -> (B, C, N, T)   (matches torch .contiguous() output layout)
    return jnp.transpose(out2.reshape(N, B, C, T), (1, 2, 0, 3))


if __name__ == "__main__":
    key = jax.random.PRNGKey(0)
    kx, ka = jax.random.split(key)

    # small shapes consistent with the module: (batch, input_dim, num_node, num_time)
    B, C, N, T = 2, 4, 16, 32
    x = jax.random.normal(kx, (B, C, N, T), jnp.float32)
    A = jax.random.normal(ka, (N, N), jnp.float32)

    out = jax.block_until_ready(nconv(x, A))
    assert out.shape == (B, C, N, T), out.shape
    assert bool(jnp.all(jnp.isfinite(out)))

    # reference check against full-precision einsum
    ref = jnp.einsum("bcvt,vw->bcwt", x, A, precision=jax.lax.Precision.HIGHEST)
    max_err = float(jnp.max(jnp.abs(out - ref)))
    assert max_err < 1e-3, max_err

    print("KERNEL_OK")
</pallas_src>

<mosaic_0001>
module attributes {stable_mosaic.version = 11 : i64} {
  func.func @_nconv_kernel(%arg0: i32, %arg1: memref<16x16xf32, #tpu.memory_space<vmem>>, %arg2: memref<16x128xf32, #tpu.memory_space<vmem>>, %arg3: memref<16x128xf32, #tpu.memory_space<vmem>>) attributes {dimension_semantics = [#tpu.dimension_semantics<parallel>], iteration_bounds = array<i64: 2>, scalar_prefetch = 0 : i64, scratch_operands = 0 : i64, tpu.core_type = #tpu.core_type<tc>, window_params = [{pipeline_mode = #tpu.pipeline_mode<synchronous>, transform_indices = @transform_0, window_bounds = array<i64: 16, 16>}, {transform_indices = @transform_1, window_bounds = array<i64: 16, 128>}, {transform_indices = @transform_2, window_bounds = array<i64: 16, 128>}]} {
    %c0 = arith.constant 0 : index
    %c0_0 = arith.constant 0 : index
    %0 = vector.load %arg1[%c0, %c0_0] : memref<16x16xf32, #tpu.memory_space<vmem>>, vector<16x16xf32>
    %c0_1 = arith.constant 0 : index
    %c0_2 = arith.constant 0 : index
    %1 = vector.load %arg2[%c0_1, %c0_2] : memref<16x128xf32, #tpu.memory_space<vmem>>, vector<16x128xf32>
    %cst = arith.constant dense<0.000000e+00> : vector<16x128xf32>
    %2 = tpu.matmul %0, %1, %cst {dimension_numbers = #tpu.dot_dimension_numbers<[1], [0], [0], [1], [0, 0, 1, 1], [], []>} : vector<16x16xf32>, vector<16x128xf32>, vector<16x128xf32> -> vector<16x128xf32>
    %c0_3 = arith.constant 0 : index
    %c0_4 = arith.constant 0 : index
    %3 = vector.load %arg3[%c0_3, %c0_4] : memref<16x128xf32, #tpu.memory_space<vmem>>, vector<16x128xf32>
    tpu.vector_store %arg3[%c0_3, %c0_4], %2 {strides = array<i32>} : memref<16x128xf32, #tpu.memory_space<vmem>>, vector<16x128xf32>,
    return
  }
  func.func @transform_0(%arg0: i32) -> (i32, i32) {
    %c0_i32 = arith.constant 0 : i32
    %c0_i32_0 = arith.constant 0 : i32
    %c0_i32_1 = arith.constant 0 : i32
    return %c0_i32, %c0_i32_0 : i32, i32
  }
  func.func @transform_1(%arg0: i32) -> (i32, i32) {
    %c0_i32 = arith.constant 0 : i32
    %c0_i32_0 = arith.constant 0 : i32
    return %c0_i32, %arg0 : i32, i32
  }
  func.func @transform_2(%arg0: i32) -> (i32, i32) {
    %c0_i32 = arith.constant 0 : i32
    %c0_i32_0 = arith.constant 0 : i32
    return %c0_i32, %arg0 : i32, i32
  }
}

</mosaic_0001>

<bundles_post_ra>
// kernel: nconv.1
= control target key start
LH: loop header
LB: loop body
LE: loop exit
PB: predicated region body
PF: predicated region fallthrough
CT: control target
= control target key end

     0   :  { %s395_s9 = smov 0   ;;  %s397_s10 = smov 0   ;;  %s461_s0 = inlined_call_operand.vmem [shape: f32[16,16], index: 0, kind: input, shape index: {}]   ;;  %s462_s1 = inlined_call_operand.vmem [shape: f32[16,256], index: 1, kind: input, shape index: {}]   ;;  %s463_s2 = inlined_call_operand.vmem [shape: f32[16,256], index: 2, kind: output, shape index: {}]  }
   0x1   :  { %s399_s11 = smov 0  }
   0x2 LB: > { %s315_s12 = sadd.s32 4294967295, %s378_s11   ;;  %s412_s13 = sadd.s32 1, %s378_s11   ;;  %s378_s11 = sphi %s399_s11, %s467_s11   ;;  %s374_s10 = sphi %s397_s10, %s466_s10   ;;  %s370_s9 = sphi %s395_s9, %s465_s9  }
   0x3   : > { %s37_s14 = ssub.s32 %s378_s11, %s412_s13  ;;  %s40_s15 = sadd.s32 1, %s374_s10 }
   0x4   : > { %p38_p0 = scmp.eq.s32.totalorder %s37_s14, 0  ;;  %p47_p1 = scmp.ne.s32.totalorder %s374_s10, %s370_s9 }
   0x5   : > { %p48_p2 = scmp.eq.s32.totalorder %s378_s11, 0  ;;  %p77_p3 = scmp.eq.s32.totalorder %s315_s12, 1 }
   0x6   : > { %s423_s16 = scalar_select %p38_p0, %s374_s10, %s40_s15  }
   0x7   : > { %p49_p4 = por %p48_p2, %p47_p1  ;;  %p425_p5 = por %p77_p3, %p47_p1 }
   0x8   : > { %p318_p6 = scmp.ge.s32.totalorder %s378_s11, 2 }
   0xa   : > { %102 = sbr.rel (%p318_p6) target bundleno = 21 (0x15), region = 20 }
   0xf   : > { %105 = sbr.rel (!%p49_p4) target bundleno = 21 (0x15), region = 24  ;;  %s107_s18 = sand.u32 (%p49_p4), 1, %s374_s10  }
  0x10   : > { %s320_s19 = sshll.u32 (%p49_p4), %s378_s11, 3  ;;  %s319_s20 = sshll.u32 (%p49_p4), %s107_s18, 4 }
  0x11   : > { %s111_s23 = scalar_lea.vmem (%p49_p4), %s462_s1, %s320_s19  ;;  %s109_s24 = scalar_lea.vmem (%p49_p4), [#allocation2], %s319_s20 }
  0x12   : > { %v142_v0 = vld [vmem:[%s111_s23] sm:$0xff] (%p49_p4)  ;;  %v144_v1 = vld [vmem:[%s111_s23 + $0x10] sm:$0xff] (%p49_p4) }
  0x13   : > { %143 = vst [vmem:[%s109_s24] sm:$0xff] (%p49_p4), %v142_v0 }
  0x14   : > { %145 = vst [vmem:[%s109_s24 + $0x8] sm:$0xff] %v144_v1 }
  0x15 PF: > { %p321_p7 = scmp.ge.s32.totalorder %s378_s11, 1  ;;  %p150_p8 = scmp.lt.s32.totalorder %s378_s11, 3 }
  0x17   : > { %p151_p9 = pnand %p321_p7, %p150_p8 }
  0x18   : > { %s157_s25 = sand.u32 (!%p151_p9), 1, %s370_s9  }
  0x19   : > { %154 = sbr.rel (%p151_p9) target bundleno = 170 (0xaa), region = 62  ;;  %s322_s26 = sshll.u32 (!%p151_p9), %s157_s25, 4 }
  0x1a   : > { %s159_s27 = scalar_lea.vmem (!%p151_p9), [#allocation2], %s322_s26  ;;  %s176_s4 = scalar_lea.vmem (!%p151_p9), [#allocation3], %s322_s26 }
  0x1e   : > { %v180_v2 = vld [vmem:[%s159_s27 + $0x8] sm:$0xff]  ;;  %v179_v3 = vld [vmem:[%s159_s27] sm:$0xff]  ;;  %vm181_vm0 = vcmask 130048   ;;  %s327_s5 = sshll.u32 (%p425_p5), %s315_s12, 3 }
  0x1f   : > { %202 = vmatpush.msra.mxu0 %v180_v2  ;;  %330 = vmatpush.msra.mxu1 %v180_v2  ;;  %v177_v4 = vld [vmem:[%s461_s0] sm:$0xff]  ;;  %v178_v5 = vld [vmem:[%s461_s0 + $0x8] sm:$0xff]  ;;  %s221_s8 = scalar_lea.vmem (%p425_p5), %s463_s2, %s327_s5 }
  0x21   : > { %203 = vmatpush.msra.mxu0 %v179_v3  ;;  %331 = vmatpush.msra.mxu1 %v179_v3 }
  0x22   : > { %324 = vmatmul.msk.f32.vlgmr.msra.gmra.mxu0 %vm181_vm0, %v177_v4  ;;  %325 = vmatmul.msk.f32.vlgmr.msra.gmra.mxu1 %vm181_vm0, %v178_v5 }
  0x9d   : > { %219 = sbr.rel (!%p425_p5) target bundleno = 170 (0xaa), region = 70 }
  0x9f   : > { %v205_v6 = vpop.f32.mrf.mxu0  ;;  %v208_v7 = vpop.f32.mrf.mxu1 }
  0xa0   : > { %211 = vst [vmem:[%s176_s4] sm:$0xff] %v205_v6 }
  0xa1   : > { %212 = vst [vmem:[%s176_s4 + $0x8] sm:$0xff] %v208_v7 }
  0xa7   : > { %v252_v8 = vld [vmem:[%s176_s4] sm:$0xff] }
  0xa8   : > { %v254_v9 = vld [vmem:[%s176_s4 + $0x8] sm:$0xff]  ;;  %253 = vst [vmem:[%s221_s8] sm:$0xff] %v252_v8 }
  0xa9   : > { %255 = vst [vmem:[%s221_s8 + $0x10] sm:$0xff] %v254_v9 }
  0xaa PF: > { %p9_p10 = scmp.ge.s32.totalorder %s412_s13, 4   ;;  %s465_s9 = smov %s374_s10 }
  0xab   : > { %s466_s10 = smov %s423_s16  ;;  %s467_s11 = smov %s412_s13 }
  0xac   :  { %11 = sbr.rel (!%p9_p10) target bundleno = 2 (0x2), region = 139 }

</bundles_post_ra>
